<compile_context>
chip_gen: v7x
topology: tpu7x:2x2x1
jax: 0.10.0
libtpu: 0.0.40
codegen_flags: <defaults>
</compile_context>

<pallas_src>
import functools

import jax
import jax.numpy as jnp
from jax import lax
from jax.experimental import pallas as pl
from jax.experimental.pallas import tpu as pltpu


def _conv_layer_kernel(xs_ref, m1_ref, m2_ref, b1_ref, b2_ref, o_ref,
                       *, bb, H, W, C_out, eps):
    WC = W * C_out
    M = bb * H
    inv_n = 1.0 / float(H * W)

    def inorm_relu(a):
        # Per-sample InstanceNorm2d(affine=False, biased var) + ReLU on a (H, WC) block.
        # Row-sums (sublane reduce), then a rotate-and-add lane butterfly turns the (w, c)
        # lane sums into per-channel sums already broadcast to every lane of that channel.
        cs = jnp.sum(a, axis=0, keepdims=True)            # (1, WC)  sum_x
        css = jnp.sum(a * a, axis=0, keepdims=True)       # (1, WC)  sum_x^2
        st = jnp.concatenate([cs, css], axis=0)           # (2, WC)
        shift = C_out
        while shift < WC:                                 # log2(W) XLU rolls + f32 VPU adds
            st = st + pltpu.roll(st, shift, axis=1)
            shift *= 2
        mean = st[0:1] * inv_n
        var = st[1:2] * inv_n - mean * mean               # biased, one-pass (fine in f32 here)
        return jnp.maximum((a - mean) * lax.rsqrt(var + eps), 0.0)

    def per_sample(a):
        if bb == 1:
            return inorm_relu(a)
        # H is a multiple of 8 -> these row slices / concat are tile-aligned (no relayout).
        return jnp.concatenate(
            [inorm_relu(a[s * H:(s + 1) * H]) for s in range(bb)], axis=0)

    # ---- conv1: single (M, 3*W*C_in) @ (3*W*C_in, WC) matmul (taps pre-shifted in wrapper) --
    acc = jnp.dot(xs_ref[...], m1_ref[...],
                  preferred_element_type=jnp.float32) + b1_ref[...]      # (M, WC) f32
    y1 = per_sample(acc)
    # TODO(synk): Dropout2d is identity in eval mode; train-mode stochastic channel dropout
    # (pltpu.prng_*) is not implemented here.

    # ---- conv2: single (M, WC) @ (WC, 3*WC) matmul; vertical taps applied on the output ----
    p = jnp.dot(y1.astype(jnp.bfloat16), m2_ref[...],
                preferred_element_type=jnp.float32)                      # (M, 3*WC) f32
    p0 = p[:, 0:WC]              # lane slices at 128-lane boundaries: full-vreg, free
    p1 = p[:, WC:2 * WC]
    p2 = p[:, 2 * WC:3 * WC]
    r = lax.broadcasted_iota(jnp.int32, (M, WC), 0) % H                  # row within sample
    dn = jnp.where(r >= 1, pltpu.roll(p0, 1, axis=0), 0.0)               # out[i] += P0[i-1]
    up = jnp.where(r <= H - 2, pltpu.roll(p2, M - 1, axis=0), 0.0)       # out[i] += P2[i+1]
    acc2 = p1 + dn + up + b2_ref[...]

    # ---- InstanceNorm2d + ReLU; lane-dense (rows, W*C_out) store ----
    o_ref[...] = per_sample(acc2)


def _build_banded(w_oihw, W):
    """(C_out, C_in, 3, 3) OIHW conv weight -> (3, W*C_in, W*C_out) banded matrices.

    M[dy][w_in*C_in + c, w*C_out + o] = w[o, c, dy, w_in + 1 - w] for in-range horizontal
    taps, else 0 — the horizontal zero padding is absorbed into the matrix, so the kernel's
    lhs never needs lane shifts.
    """
    C_out, C_in, KH, KW = w_oihw.shape
    wt = jnp.transpose(w_oihw, (2, 3, 1, 0)).astype(jnp.float32)   # (KH, KW, C_in, C_out)
    u = jnp.arange(W + 2)[:, None]                                 # padded input pixel index
    w = jnp.arange(W)[None, :]                                     # output pixel index
    d = u - w                                                      # horizontal tap index dx
    valid = ((d >= 0) & (d < KW)).astype(jnp.float32)[..., None, None]
    dcl = jnp.clip(d, 0, KW - 1)
    mats = []
    for dy in range(KH):
        blk = wt[dy][dcl] * valid                                  # (W+2, W, C_in, C_out)
        mp = jnp.transpose(blk, (0, 2, 1, 3)).reshape((W + 2) * C_in, W * C_out)
        mats.append(mp[C_in:(W + 1) * C_in, :])                    # drop horizontal halo rows
    return jnp.stack(mats, axis=0)                                 # (3, W*C_in, W*C_out)


def _default_batch_block(B):
    # v7x has 2 TensorCores/chip -> keep one sample per grid step ("parallel" shards across
    # cores).  Single-TC v5e/v6e -> fold the whole batch into one step: saves the ~0.35 us
    # fixed per-step overhead and doubles matmul M (better MXU fill).
    try:
        kind = jax.devices()[0].device_kind.lower()
    except Exception:
        kind = ""
    if "v7" in kind or "7x" in kind:
        return 1
    return B


def conv_layer_forward(x_nchw, w1, b1, w2, b2, eps=1e-5, batch_block=None):
    """x_nchw: (B, C_in, H, W). w: PyTorch OIHW. Returns (B, C_out, H, W), eval-mode semantics."""
    B, C_in, H, W = x_nchw.shape
    C_out = w1.shape[0]
    WC_in, WC = W * C_in, W * C_out
    if W & (W - 1):
        # TODO(synk): non-power-of-two W needs a different per-channel reduction (e.g. a
        # precomputed selection-matrix input); not needed for this module's shapes.
        raise NotImplementedError("W must be a power of two for the lane butterfly reduction")

    bb = batch_block if batch_block is not None else _default_batch_block(B)
    assert B % bb == 0

    # Layout glue in plain JAX (tiny, one-off): NCHW -> lane-flattened (B, H, W*C_in), pad
    # rows, pre-shift + lane-concat the 3 vertical taps, flatten batch onto rows, cast bf16.
    xf = jnp.transpose(x_nchw, (0, 2, 3, 1)).reshape(B, H, WC_in)
    xp = jnp.pad(xf, ((0, 0), (1, 1), (0, 0)))                             # (B, H+2, W*C_in)
    xs = jnp.concatenate([xp[:, dy:dy + H, :] for dy in range(3)], axis=-1)
    xs = xs.reshape(B * H, 3 * WC_in).astype(jnp.bfloat16)                 # (B*H, 3*W*C_in)

    m1 = _build_banded(w1, W)                                              # (3, W*C_in, WC)
    m2 = _build_banded(w2, W)                                              # (3, WC,     WC)
    m1cat = m1.reshape(3 * WC_in, WC).astype(jnp.bfloat16)                 # K-concat (conv1)
    m2cat = jnp.concatenate([m2[dy] for dy in range(3)],
                            axis=1).astype(jnp.bfloat16)                   # N-concat (conv2)
    b1t = jnp.tile(b1.astype(jnp.float32), W).reshape(1, WC)               # lane = w*C_out + o
    b2t = jnp.tile(b2.astype(jnp.float32), W).reshape(1, WC)

    kernel = functools.partial(_conv_layer_kernel, bb=bb, H=H, W=W, C_out=C_out, eps=eps)

    out = pl.pallas_call(
        kernel,
        out_shape=jax.ShapeDtypeStruct((B * H, WC), jnp.float32),
        grid_spec=pltpu.PrefetchScalarGridSpec(
            num_scalar_prefetch=0,
            grid=(B // bb,),
            in_specs=[
                pl.BlockSpec((bb * H, 3 * WC_in), lambda i: (i, 0)),       # pre-shifted lhs
                pl.BlockSpec((3 * WC_in, WC), lambda i: (0, 0)),           # constant weights,
                pl.BlockSpec((WC, 3 * WC), lambda i: (0, 0)),              #   fetched once
                pl.BlockSpec((1, WC), lambda i: (0, 0)),
                pl.BlockSpec((1, WC), lambda i: (0, 0)),
            ],
            out_specs=pl.BlockSpec((bb * H, WC), lambda i: (i, 0)),
        ),
        compiler_params=pltpu.CompilerParams(dimension_semantics=("parallel",)),
    )(xs, m1cat, m2cat, b1t, b2t)

    # TODO(synk): at large W*C the (W*C)^2 banded RHS outgrows VMEM (64 MiB cap on v7x) —
    # add output-column (W-band) tiling of m1cat/m2cat and single-buffer the constant RHS.
    return jnp.transpose(out.reshape(B, H, W, C_out), (0, 3, 1, 2))        # back to NCHW


def _ref_forward(x, w1, b1, w2, b2, eps=1e-5, matmul_dtype=jnp.float32):
    """Pure-JAX reference (PyTorch eval-mode semantics, NCHW). matmul_dtype=bfloat16 reproduces
    the kernel's bf16-operand / f32-accumulate MXU arithmetic for a tight comparison."""
    def conv(x, w, b):
        y = lax.conv_general_dilated(
            x.astype(matmul_dtype), w.astype(matmul_dtype),
            window_strides=(1, 1), padding=((1, 1), (1, 1)),
            dimension_numbers=("NCHW", "OIHW", "NCHW"),
            preferred_element_type=jnp.float32)
        return y + b[None, :, None, None].astype(jnp.float32)

    def inorm(y):
        m = jnp.mean(y, axis=(2, 3), keepdims=True)
        v = jnp.mean((y - m) ** 2, axis=(2, 3), keepdims=True)
        return (y - m) * lax.rsqrt(v + eps)

    y = jnp.maximum(inorm(conv(x, w1, b1)), 0.0)
    y = jnp.maximum(inorm(conv(y, w2, b2)), 0.0)
    return y


if __name__ == "__main__":
    B, C_in, C_out, H, W = 2, 4, 8, 16, 16
    drop_probability = 0.1  # eval mode -> Dropout2d is identity

    key = jax.random.PRNGKey(0)
    k1, k2, k3, k4, k5 = jax.random.split(key, 5)
    x = jax.random.normal(k1, (B, C_in, H, W), jnp.float32)

    # Deterministic PyTorch-like uniform(-1/sqrt(fan_in), 1/sqrt(fan_in)) init.
    fan1 = float(C_in * 9)
    w1 = jax.random.uniform(k2, (C_out, C_in, 3, 3), jnp.float32, -1.0, 1.0) / jnp.sqrt(fan1)
    b1 = jax.random.uniform(k3, (C_out,), jnp.float32, -1.0, 1.0) / jnp.sqrt(fan1)
    fan2 = float(C_out * 9)
    w2 = jax.random.uniform(k4, (C_out, C_out, 3, 3), jnp.float32, -1.0, 1.0) / jnp.sqrt(fan2)
    b2 = jax.random.uniform(k5, (C_out,), jnp.float32, -1.0, 1.0) / jnp.sqrt(fan2)

    out = jax.block_until_ready(conv_layer_forward(x, w1, b1, w2, b2))
    assert out.shape == (B, C_out, H, W), out.shape

    # Tight check vs a reference using the same bf16-operand / f32-accumulate matmul arithmetic.
    ref_bf16 = _ref_forward(x, w1, b1, w2, b2, matmul_dtype=jnp.bfloat16)
    assert jnp.allclose(out, ref_bf16, atol=3e-3, rtol=3e-3), \
        float(jnp.max(jnp.abs(out - ref_bf16)))

    # Loose sanity check vs full-f32 PyTorch semantics (difference = bf16 MXU operand rounding).
    ref_f32 = _ref_forward(x, w1, b1, w2, b2, matmul_dtype=jnp.float32)
    assert jnp.allclose(out, ref_f32, atol=1e-1, rtol=1e-1), \
        float(jnp.max(jnp.abs(out - ref_f32)))

    print("KERNEL_OK")
</pallas_src>

<mosaic_0001>
module attributes {stable_mosaic.version = 11 : i64} {
  func.func @_conv_layer_kernel(%arg0: i32, %arg1: memref<32x192xbf16, #tpu.memory_space<vmem>>, %arg2: memref<192x128xbf16, #tpu.memory_space<vmem>>, %arg3: memref<128x384xbf16, #tpu.memory_space<vmem>>, %arg4: memref<1x128xf32, #tpu.memory_space<vmem>>, %arg5: memref<1x128xf32, #tpu.memory_space<vmem>>, %arg6: memref<32x128xf32, #tpu.memory_space<vmem>>) attributes {dimension_semantics = [#tpu.dimension_semantics<parallel>], iteration_bounds = array<i64: 1>, scalar_prefetch = 0 : i64, scratch_operands = 0 : i64, tpu.core_type = #tpu.core_type<tc>, window_params = [{transform_indices = @transform_0, window_bounds = array<i64: 32, 192>}, {pipeline_mode = #tpu.pipeline_mode<synchronous>, transform_indices = @transform_1, window_bounds = array<i64: 192, 128>}, {pipeline_mode = #tpu.pipeline_mode<synchronous>, transform_indices = @transform_2, window_bounds = array<i64: 128, 384>}, {pipeline_mode = #tpu.pipeline_mode<synchronous>, transform_indices = @transform_3, window_bounds = array<i64: 1, 128>}, {pipeline_mode = #tpu.pipeline_mode<synchronous>, transform_indices = @transform_4, window_bounds = array<i64: 1, 128>}, {transform_indices = @transform_5, window_bounds = array<i64: 32, 128>}]} {
    %c0 = arith.constant 0 : index
    %c0_0 = arith.constant 0 : index
    %0 = vector.load %arg1[%c0, %c0_0] : memref<32x192xbf16, #tpu.memory_space<vmem>>, vector<32x192xbf16>
    %c0_1 = arith.constant 0 : index
    %c0_2 = arith.constant 0 : index
    %1 = vector.load %arg2[%c0_1, %c0_2] : memref<192x128xbf16, #tpu.memory_space<vmem>>, vector<192x128xbf16>
    %cst = arith.constant dense<0.000000e+00> : vector<32x128xf32>
    %2 = tpu.matmul %0, %1, %cst {dimension_numbers = #tpu.dot_dimension_numbers<[1], [0], [0], [1], [0, 0, 1, 1], [], []>} : vector<32x192xbf16>, vector<192x128xbf16>, vector<32x128xf32> -> vector<32x128xf32>
    %c0_3 = arith.constant 0 : index
    %c0_4 = arith.constant 0 : index
    %3 = vector.load %arg4[%c0_3, %c0_4] : memref<1x128xf32, #tpu.memory_space<vmem>>, vector<1x128xf32>
    %4 = vector.broadcast %3 : vector<1x128xf32> to vector<32x128xf32>
    %5 = arith.addf %2, %4 : vector<32x128xf32>
    %6 = vector.extract_strided_slice %5 {offsets = [0, 0], sizes = [16, 128], strides = [1, 1]} : vector<32x128xf32> to vector<16x128xf32>
    %cst_5 = arith.constant dense<0.000000e+00> : vector<128xf32>
    %7 = vector.multi_reduction <add>, %6, %cst_5 [0] : vector<16x128xf32> to vector<128xf32>
    %8 = vector.shape_cast %7 : vector<128xf32> to vector<1x128xf32>
    %9 = arith.mulf %6, %6 : vector<16x128xf32>
    %cst_6 = arith.constant dense<0.000000e+00> : vector<128xf32>
    %10 = vector.multi_reduction <add>, %9, %cst_6 [0] : vector<16x128xf32> to vector<128xf32>
    %11 = vector.shape_cast %10 : vector<128xf32> to vector<1x128xf32>
    %12 = tpu.concatenate %8, %11 in 0 : vector<1x128xf32>, vector<1x128xf32> -> vector<2x128xf32>
    %c8_i32 = arith.constant 8 : i32
    %13 = tpu.dynamic_rotate %12 by %c8_i32 dim 1 : vector<2x128xf32>, i32 -> vector<2x128xf32>
    %14 = arith.addf %12, %13 : vector<2x128xf32>
    %c16_i32 = arith.constant 16 : i32
    %15 = tpu.dynamic_rotate %14 by %c16_i32 dim 1 : vector<2x128xf32>, i32 -> vector<2x128xf32>
    %16 = arith.addf %14, %15 : vector<2x128xf32>
    %c32_i32 = arith.constant 32 : i32
    %17 = tpu.dynamic_rotate %16 by %c32_i32 dim 1 : vector<2x128xf32>, i32 -> vector<2x128xf32>
    %18 = arith.addf %16, %17 : vector<2x128xf32>
    %c64_i32 = arith.constant 64 : i32
    %19 = tpu.dynamic_rotate %18 by %c64_i32 dim 1 : vector<2x128xf32>, i32 -> vector<2x128xf32>
    %20 = arith.addf %18, %19 : vector<2x128xf32>
    %21 = vector.extract_strided_slice %20 {offsets = [0, 0], sizes = [1, 128], strides = [1, 1]} : vector<2x128xf32> to vector<1x128xf32>
    %cst_7 = arith.constant 3.906250e-03 : f32
    %22 = vector.broadcast %cst_7 : f32 to vector<1x128xf32>
    %23 = arith.mulf %21, %22 : vector<1x128xf32>
    %24 = vector.extract_strided_slice %20 {offsets = [1, 0], sizes = [1, 128], strides = [1, 1]} : vector<2x128xf32> to vector<1x128xf32>
    %cst_8 = arith.constant 3.906250e-03 : f32
    %25 = vector.broadcast %cst_8 : f32 to vector<1x128xf32>
    %26 = arith.mulf %24, %25 : vector<1x128xf32>
    %27 = arith.mulf %23, %23 : vector<1x128xf32>
    %28 = arith.subf %26, %27 : vector<1x128xf32>
    %29 = vector.broadcast %23 : vector<1x128xf32> to vector<16x128xf32>
    %30 = arith.subf %6, %29 : vector<16x128xf32>
    %cst_9 = arith.constant 9.99999974E-6 : f32
    %31 = vector.broadcast %cst_9 : f32 to vector<1x128xf32>
    %32 = arith.addf %28, %31 : vector<1x128xf32>
    %33 = math.rsqrt %32 : vector<1x128xf32>
    %34 = vector.broadcast %33 : vector<1x128xf32> to vector<16x128xf32>
    %35 = arith.mulf %30, %34 : vector<16x128xf32>
    %cst_10 = arith.constant 0.000000e+00 : f32
    %36 = vector.broadcast %cst_10 : f32 to vector<16x128xf32>
    %37 = arith.maximumf %35, %36 : vector<16x128xf32>
    %38 = vector.extract_strided_slice %5 {offsets = [16, 0], sizes = [16, 128], strides = [1, 1]} : vector<32x128xf32> to vector<16x128xf32>
    %cst_11 = arith.constant dense<0.000000e+00> : vector<128xf32>
    %39 = vector.multi_reduction <add>, %38, %cst_11 [0] : vector<16x128xf32> to vector<128xf32>
    %40 = vector.shape_cast %39 : vector<128xf32> to vector<1x128xf32>
    %41 = arith.mulf %38, %38 : vector<16x128xf32>
    %cst_12 = arith.constant dense<0.000000e+00> : vector<128xf32>
    %42 = vector.multi_reduction <add>, %41, %cst_12 [0] : vector<16x128xf32> to vector<128xf32>
    %43 = vector.shape_cast %42 : vector<128xf32> to vector<1x128xf32>
    %44 = tpu.concatenate %40, %43 in 0 : vector<1x128xf32>, vector<1x128xf32> -> vector<2x128xf32>
    %c8_i32_13 = arith.constant 8 : i32
    %45 = tpu.dynamic_rotate %44 by %c8_i32_13 dim 1 : vector<2x128xf32>, i32 -> vector<2x128xf32>
    %46 = arith.addf %44, %45 : vector<2x128xf32>
    %c16_i32_14 = arith.constant 16 : i32
    %47 = tpu.dynamic_rotate %46 by %c16_i32_14 dim 1 : vector<2x128xf32>, i32 -> vector<2x128xf32>
    %48 = arith.addf %46, %47 : vector<2x128xf32>
    %c32_i32_15 = arith.constant 32 : i32
    %49 = tpu.dynamic_rotate %48 by %c32_i32_15 dim 1 : vector<2x128xf32>, i32 -> vector<2x128xf32>
    %50 = arith.addf %48, %49 : vector<2x128xf32>
    %c64_i32_16 = arith.constant 64 : i32
    %51 = tpu.dynamic_rotate %50 by %c64_i32_16 dim 1 : vector<2x128xf32>, i32 -> vector<2x128xf32>
    %52 = arith.addf %50, %51 : vector<2x128xf32>
    %53 = vector.extract_strided_slice %52 {offsets = [0, 0], sizes = [1, 128], strides = [1, 1]} : vector<2x128xf32> to vector<1x128xf32>
    %cst_17 = arith.constant 3.906250e-03 : f32
    %54 = vector.broadcast %cst_17 : f32 to vector<1x128xf32>
    %55 = arith.mulf %53, %54 : vector<1x128xf32>
    %56 = vector.extract_strided_slice %52 {offsets = [1, 0], sizes = [1, 128], strides = [1, 1]} : vector<2x128xf32> to vector<1x128xf32>
    %cst_18 = arith.constant 3.906250e-03 : f32
    %57 = vector.broadcast %cst_18 : f32 to vector<1x128xf32>
    %58 = arith.mulf %56, %57 : vector<1x128xf32>
    %59 = arith.mulf %55, %55 : vector<1x128xf32>
    %60 = arith.subf %58, %59 : vector<1x128xf32>
    %61 = vector.broadcast %55 : vector<1x128xf32> to vector<16x128xf32>
    %62 = arith.subf %38, %61 : vector<16x128xf32>
    %cst_19 = arith.constant 9.99999974E-6 : f32
    %63 = vector.broadcast %cst_19 : f32 to vector<1x128xf32>
    %64 = arith.addf %60, %63 : vector<1x128xf32>
    %65 = math.rsqrt %64 : vector<1x128xf32>
    %66 = vector.broadcast %65 : vector<1x128xf32> to vector<16x128xf32>
    %67 = arith.mulf %62, %66 : vector<16x128xf32>
    %cst_20 = arith.constant 0.000000e+00 : f32
    %68 = vector.broadcast %cst_20 : f32 to vector<16x128xf32>
    %69 = arith.maximumf %67, %68 : vector<16x128xf32>
    %70 = tpu.concatenate %37, %69 in 0 : vector<16x128xf32>, vector<16x128xf32> -> vector<32x128xf32>
    %71 = arith.truncf %70 : vector<32x128xf32> to vector<32x128xbf16>
    %c0_21 = arith.constant 0 : index
    %c0_22 = arith.constant 0 : index
    %72 = vector.load %arg3[%c0_21, %c0_22] : memref<128x384xbf16, #tpu.memory_space<vmem>>, vector<128x384xbf16>
    %cst_23 = arith.constant dense<0.000000e+00> : vector<32x384xf32>
    %73 = tpu.matmul %71, %72, %cst_23 {dimension_numbers = #tpu.dot_dimension_numbers<[1], [0], [0], [1], [0, 0, 1, 1], [], []>} : vector<32x128xbf16>, vector<128x384xbf16>, vector<32x384xf32> -> vector<32x384xf32>
    %74 = vector.extract_strided_slice %73 {offsets = [0, 0], sizes = [32, 128], strides = [1, 1]} : vector<32x384xf32> to vector<32x128xf32>
    %75 = vector.extract_strided_slice %73 {offsets = [0, 128], sizes = [32, 128], strides = [1, 1]} : vector<32x384xf32> to vector<32x128xf32>
    %76 = vector.extract_strided_slice %73 {offsets = [0, 256], sizes = [32, 128], strides = [1, 1]} : vector<32x384xf32> to vector<32x128xf32>
    %77 = tpu.iota {dimensions = array<i32: 0>} : vector<32x128xi32>
    %c16_i32_24 = arith.constant 16 : i32
    %c0_i32 = arith.constant 0 : i32
    %78 = arith.cmpi eq, %c16_i32_24, %c0_i32 : i32
    %c1_i32 = arith.constant 1 : i32
    %79 = arith.select %78, %c1_i32, %c16_i32_24 : i32
    %80 = vector.broadcast %79 : i32 to vector<32x128xi32>
    %81 = arith.remsi %77, %80 : vector<32x128xi32>
    %c0_i32_25 = arith.constant 0 : i32
    %82 = vector.broadcast %c0_i32_25 : i32 to vector<32x128xi32>
    %83 = arith.cmpi ne, %81, %82 : vector<32x128xi32>
    %c0_i32_26 = arith.constant 0 : i32
    %84 = vector.broadcast %c0_i32_26 : i32 to vector<32x128xi32>
    %85 = arith.cmpi slt, %81, %84 : vector<32x128xi32>
    %c0_i32_27 = arith.constant 0 : i32
    %86 = arith.cmpi slt, %79, %c0_i32_27 : i32
    %87 = vector.broadcast %86 : i1 to vector<32x128xi1>
    %88 = vector.broadcast %87 : vector<32x128xi1> to vector<32x128xi1>
    %89 = arith.xori %85, %88 : vector<32x128xi1>
    %90 = arith.andi %89, %83 : vector<32x128xi1>
    %91 = vector.broadcast %79 : i32 to vector<32x128xi32>
    %92 = arith.addi %81, %91 : vector<32x128xi32>
    %93 = arith.select %90, %92, %81 : vector<32x128xi1>, vector<32x128xi32>
    %c1_i32_28 = arith.constant 1 : i32
    %94 = vector.broadcast %c1_i32_28 : i32 to vector<32x128xi32>
    %95 = arith.cmpi sge, %93, %94 : vector<32x128xi32>
    %c1_i32_29 = arith.constant 1 : i32
    %96 = tpu.dynamic_rotate %74 by %c1_i32_29 dim 0 : vector<32x128xf32>, i32 -> vector<32x128xf32>
    %cst_30 = arith.constant 0.000000e+00 : f32
    %97 = vector.broadcast %cst_30 : f32 to vector<32x128xf32>
    %98 = arith.select %95, %96, %97 : vector<32x128xi1>, vector<32x128xf32>
    %c14_i32 = arith.constant 14 : i32
    %99 = vector.broadcast %c14_i32 : i32 to vector<32x128xi32>
    %100 = arith.cmpi sle, %93, %99 : vector<32x128xi32>
    %c31_i32 = arith.constant 31 : i32
    %101 = tpu.dynamic_rotate %76 by %c31_i32 dim 0 : vector<32x128xf32>, i32 -> vector<32x128xf32>
    %cst_31 = arith.constant 0.000000e+00 : f32
    %102 = vector.broadcast %cst_31 : f32 to vector<32x128xf32>
    %103 = arith.select %100, %101, %102 : vector<32x128xi1>, vector<32x128xf32>
    %104 = arith.addf %75, %98 : vector<32x128xf32>
    %105 = arith.addf %104, %103 : vector<32x128xf32>
    %c0_32 = arith.constant 0 : index
    %c0_33 = arith.constant 0 : index
    %106 = vector.load %arg5[%c0_32, %c0_33] : memref<1x128xf32, #tpu.memory_space<vmem>>, vector<1x128xf32>
    %107 = vector.broadcast %106 : vector<1x128xf32> to vector<32x128xf32>
    %108 = arith.addf %105, %107 : vector<32x128xf32>
    %109 = vector.extract_strided_slice %108 {offsets = [0, 0], sizes = [16, 128], strides = [1, 1]} : vector<32x128xf32> to vector<16x128xf32>
    %cst_34 = arith.constant dense<0.000000e+00> : vector<128xf32>
    %110 = vector.multi_reduction <add>, %109, %cst_34 [0] : vector<16x128xf32> to vector<128xf32>
    %111 = vector.shape_cast %110 : vector<128xf32> to vector<1x128xf32>
    %112 = arith.mulf %109, %109 : vector<16x128xf32>
    %cst_35 = arith.constant dense<0.000000e+00> : vector<128xf32>
    %113 = vector.multi_reduction <add>, %112, %cst_35 [0] : vector<16x128xf32> to vector<128xf32>
    %114 = vector.shape_cast %113 : vector<128xf32> to vector<1x128xf32>
    %115 = tpu.concatenate %111, %114 in 0 : vector<1x128xf32>, vector<1x128xf32> -> vector<2x128xf32>
    %c8_i32_36 = arith.constant 8 : i32
    %116 = tpu.dynamic_rotate %115 by %c8_i32_36 dim 1 : vector<2x128xf32>, i32 -> vector<2x128xf32>
    %117 = arith.addf %115, %116 : vector<2x128xf32>
    %c16_i32_37 = arith.constant 16 : i32
    %118 = tpu.dynamic_rotate %117 by %c16_i32_37 dim 1 : vector<2x128xf32>, i32 -> vector<2x128xf32>
    %119 = arith.addf %117, %118 : vector<2x128xf32>
    %c32_i32_38 = arith.constant 32 : i32
    %120 = tpu.dynamic_rotate %119 by %c32_i32_38 dim 1 : vector<2x128xf32>, i32 -> vector<2x128xf32>
    %121 = arith.addf %119, %120 : vector<2x128xf32>
    %c64_i32_39 = arith.constant 64 : i32
    %122 = tpu.dynamic_rotate %121 by %c64_i32_39 dim 1 : vector<2x128xf32>, i32 -> vector<2x128xf32>
    %123 = arith.addf %121, %122 : vector<2x128xf32>
    %124 = vector.extract_strided_slice %123 {offsets = [0, 0], sizes = [1, 128], strides = [1, 1]} : vector<2x128xf32> to vector<1x128xf32>
    %cst_40 = arith.constant 3.906250e-03 : f32
    %125 = vector.broadcast %cst_40 : f32 to vector<1x128xf32>
    %126 = arith.mulf %124, %125 : vector<1x128xf32>
    %127 = vector.extract_strided_slice %123 {offsets = [1, 0], sizes = [1, 128], strides = [1, 1]} : vector<2x128xf32> to vector<1x128xf32>
    %cst_41 = arith.constant 3.906250e-03 : f32
    %128 = vector.broadcast %cst_41 : f32 to vector<1x128xf32>
    %129 = arith.mulf %127, %128 : vector<1x128xf32>
    %130 = arith.mulf %126, %126 : vector<1x128xf32>
    %131 = arith.subf %129, %130 : vector<1x128xf32>
    %132 = vector.broadcast %126 : vector<1x128xf32> to vector<16x128xf32>
    %133 = arith.subf %109, %132 : vector<16x128xf32>
    %cst_42 = arith.constant 9.99999974E-6 : f32
    %134 = vector.broadcast %cst_42 : f32 to vector<1x128xf32>
    %135 = arith.addf %131, %134 : vector<1x128xf32>
    %136 = math.rsqrt %135 : vector<1x128xf32>
    %137 = vector.broadcast %136 : vector<1x128xf32> to vector<16x128xf32>
    %138 = arith.mulf %133, %137 : vector<16x128xf32>
    %cst_43 = arith.constant 0.000000e+00 : f32
    %139 = vector.broadcast %cst_43 : f32 to vector<16x128xf32>
    %140 = arith.maximumf %138, %139 : vector<16x128xf32>
    %141 = vector.extract_strided_slice %108 {offsets = [16, 0], sizes = [16, 128], strides = [1, 1]} : vector<32x128xf32> to vector<16x128xf32>
    %cst_44 = arith.constant dense<0.000000e+00> : vector<128xf32>
    %142 = vector.multi_reduction <add>, %141, %cst_44 [0] : vector<16x128xf32> to vector<128xf32>
    %143 = vector.shape_cast %142 : vector<128xf32> to vector<1x128xf32>
    %144 = arith.mulf %141, %141 : vector<16x128xf32>
    %cst_45 = arith.constant dense<0.000000e+00> : vector<128xf32>
    %145 = vector.multi_reduction <add>, %144, %cst_45 [0] : vector<16x128xf32> to vector<128xf32>
    %146 = vector.shape_cast %145 : vector<128xf32> to vector<1x128xf32>
    %147 = tpu.concatenate %143, %146 in 0 : vector<1x128xf32>, vector<1x128xf32> -> vector<2x128xf32>
    %c8_i32_46 = arith.constant 8 : i32
    %148 = tpu.dynamic_rotate %147 by %c8_i32_46 dim 1 : vector<2x128xf32>, i32 -> vector<2x128xf32>
    %149 = arith.addf %147, %148 : vector<2x128xf32>
    %c16_i32_47 = arith.constant 16 : i32
    %150 = tpu.dynamic_rotate %149 by %c16_i32_47 dim 1 : vector<2x128xf32>, i32 -> vector<2x128xf32>
    %151 = arith.addf %149, %150 : vector<2x128xf32>
    %c32_i32_48 = arith.constant 32 : i32
    %152 = tpu.dynamic_rotate %151 by %c32_i32_48 dim 1 : vector<2x128xf32>, i32 -> vector<2x128xf32>
    %153 = arith.addf %151, %152 : vector<2x128xf32>
    %c64_i32_49 = arith.constant 64 : i32
    %154 = tpu.dynamic_rotate %153 by %c64_i32_49 dim 1 : vector<2x128xf32>, i32 -> vector<2x128xf32>
    %155 = arith.addf %153, %154 : vector<2x128xf32>
    %156 = vector.extract_strided_slice %155 {offsets = [0, 0], sizes = [1, 128], strides = [1, 1]} : vector<2x128xf32> to vector<1x128xf32>
    %cst_50 = arith.constant 3.906250e-03 : f32
    %157 = vector.broadcast %cst_50 : f32 to vector<1x128xf32>
    %158 = arith.mulf %156, %157 : vector<1x128xf32>
    %159 = vector.extract_strided_slice %155 {offsets = [1, 0], sizes = [1, 128], strides = [1, 1]} : vector<2x128xf32> to vector<1x128xf32>
    %cst_51 = arith.constant 3.906250e-03 : f32
    %160 = vector.broadcast %cst_51 : f32 to vector<1x128xf32>
    %161 = arith.mulf %159, %160 : vector<1x128xf32>
    %162 = arith.mulf %158, %158 : vector<1x128xf32>
    %163 = arith.subf %161, %162 : vector<1x128xf32>
    %164 = vector.broadcast %158 : vector<1x128xf32> to vector<16x128xf32>
    %165 = arith.subf %141, %164 : vector<16x128xf32>
    %cst_52 = arith.constant 9.99999974E-6 : f32
    %166 = vector.broadcast %cst_52 : f32 to vector<1x128xf32>
    %167 = arith.addf %163, %166 : vector<1x128xf32>
    %168 = math.rsqrt %167 : vector<1x128xf32>
    %169 = vector.broadcast %168 : vector<1x128xf32> to vector<16x128xf32>
    %170 = arith.mulf %165, %169 : vector<16x128xf32>
    %cst_53 = arith.constant 0.000000e+00 : f32
    %171 = vector.broadcast %cst_53 : f32 to vector<16x128xf32>
    %172 = arith.maximumf %170, %171 : vector<16x128xf32>
    %173 = tpu.concatenate %140, %172 in 0 : vector<16x128xf32>, vector<16x128xf32> -> vector<32x128xf32>
    %c0_54 = arith.constant 0 : index
    %c0_55 = arith.constant 0 : index
    %174 = vector.load %arg6[%c0_54, %c0_55] : memref<32x128xf32, #tpu.memory_space<vmem>>, vector<32x128xf32>
    tpu.vector_store %arg6[%c0_54, %c0_55], %173 {strides = array<i32>} : memref<32x128xf32, #tpu.memory_space<vmem>>, vector<32x128xf32>,
    return
  }
  func.func @transform_0(%arg0: i32) -> (i32, i32) {
    %c0_i32 = arith.constant 0 : i32
    %c0_i32_0 = arith.constant 0 : i32
    return %arg0, %c0_i32 : i32, i32
  }
  func.func @transform_1(%arg0: i32) -> (i32, i32) {
    %c0_i32 = arith.constant 0 : i32
    %c0_i32_0 = arith.constant 0 : i32
    %c0_i32_1 = arith.constant 0 : i32
    return %c0_i32, %c0_i32_0 : i32, i32
  }
  func.func @transform_2(%arg0: i32) -> (i32, i32) {
    %c0_i32 = arith.constant 0 : i32
    %c0_i32_0 = arith.constant 0 : i32
    %c0_i32_1 = arith.constant 0 : i32
    return %c0_i32, %c0_i32_0 : i32, i32
  }
  func.func @transform_3(%arg0: i32) -> (i32, i32) {
    %c0_i32 = arith.constant 0 : i32
    %c0_i32_0 = arith.constant 0 : i32
    %c0_i32_1 = arith.constant 0 : i32
    return %c0_i32, %c0_i32_0 : i32, i32
  }
  func.func @transform_4(%arg0: i32) -> (i32, i32) {
    %c0_i32 = arith.constant 0 : i32
    %c0_i32_0 = arith.constant 0 : i32
    %c0_i32_1 = arith.constant 0 : i32
    return %c0_i32, %c0_i32_0 : i32, i32
  }
  func.func @transform_5(%arg0: i32) -> (i32, i32) {
    %c0_i32 = arith.constant 0 : i32
    %c0_i32_0 = arith.constant 0 : i32
    return %arg0, %c0_i32 : i32, i32
  }
}

</mosaic_0001>

<bundles_post_ra>
// kernel: tpu_custom_call.1
= control target key start
LH: loop header
LB: loop body
LE: loop exit
PB: predicated region body
PF: predicated region fallthrough
CT: control target
= control target key end

     0   :  { %10 = vsyncpa [#allocation3], 0  ;;  %s1299_s0 = inlined_call_operand.hbm [shape: bf16[32,192], index: 0, kind: input, shape index: {}]   ;;  %s1300_s1 = inlined_call_operand.hbm [shape: bf16[192,128], index: 1, kind: input, shape index: {}]   ;;  %s1301_s2 = inlined_call_operand.hbm [shape: bf16[128,384], index: 2, kind: input, shape index: {}]   ;;  %s1302_s3 = inlined_call_operand.vmem [shape: f32[1,128], index: 3, kind: input, shape index: {}]   ;;  %s1303_s4 = inlined_call_operand.vmem [shape: f32[1,128], index: 4, kind: input, shape index: {}]   ;;  %s1304_s5 = inlined_call_operand.hbm [shape: f32[32,128], index: 5, kind: output, shape index: {}]  }
   0x1   :  { %11 = vsyncpa [#allocation6], 0 }
   0x2   :  { %12 = vsyncpa [#allocation4], 0  ;;  %s1080_s18 = smov [#allocation5]   ;;  %s986_s22 = scalar_lea.hbm %s1300_s1, 1536 }
   0x3   :  { %s30_s19 = sshll.u32 %s1080_s18, 4  ;;  %p987_p0 = scmp.ne.s32.totalorder %s1300_s1, %s986_s22  ;;  %s31_s19 = int_to_ptr.vmem [resolvable:$true] %s30_s19 }
   0x4   :  { %p990_p1 = scmp.lt.u32.totalorder %s986_s22, %s1300_s1 }
   0x6   :  { %p992_p2 = pnand %p990_p1, %p987_p0 }
   0x8   :  { %995 = shalt.err (!%p992_p2)
}
   0x9   :  { %s996_s27 = scalar_lea.vmem %s31_s19, 1536  ;;  %p1001_p4 = scmp.lt.s32.totalorder %s31_s19, %s31_s19 }
   0xa   :  { %p997_p3 = scmp.ne.s32.totalorder %s31_s19, %s996_s27  ;;  %p1002_p5 = scmp.lt.s32.totalorder %s996_s27, %s996_s27 }
   0xc   :  { %p1003_p6 = por %p1002_p5, %p1001_p4 }
   0xe   :  { %p1004_p7 = pnand %p1003_p6, %p997_p3 }
  0x10   :  { %1007 = shalt.err (!%p1004_p7)
}
  0x11   :  { %s1081_s28 = smov 64   ;;  %s1082_s29 = smov 4  }
  0x12   :  { %36 = dma.hbm_to_vmem [thread:$0]  %s1300_s1, 1536, %s31_s19, [#allocation6], %s1081_s28, %s1081_s28, %s1082_s29  }
  0x13   :  { %s1083_s7 = smov [#allocation2]   ;;  %s1008_s11 = scalar_lea.hbm %s1299_s0, 512 }
  0x14   :  { %s18_s8 = sshll.u32 %s1083_s7, 4  ;;  %p1009_p8 = scmp.ne.s32.totalorder %s1299_s0, %s1008_s11  ;;  %s19_s8 = int_to_ptr.vmem [resolvable:$true] %s18_s8 }
  0x15   :  { %p1012_p9 = scmp.lt.u32.totalorder %s1008_s11, %s1299_s0 }
  0x17   :  { %p1014_p10 = pnand %p1012_p9, %p1009_p8 }
  0x19   :  { %1017 = shalt.err (!%p1014_p10)
}
  0x1a   :  { %s1018_s16 = scalar_lea.vmem %s19_s8, 512  ;;  %p1023_p12 = scmp.lt.s32.totalorder %s19_s8, %s19_s8 }
  0x1b   :  { %p1019_p11 = scmp.ne.s32.totalorder %s19_s8, %s1018_s16  ;;  %p1024_p13 = scmp.lt.s32.totalorder %s1018_s16, %s1018_s16 }
  0x1d   :  { %p1025_p0 = por %p1024_p13, %p1023_p12 }
  0x1f   :  { %p1026_p1 = pnand %p1025_p0, %p1019_p11 }
  0x21   :  { %1029 = shalt.err (!%p1026_p1)
}
  0x22   :  { %s1084_s1 = smov 128   ;;  %s1085_s17 = smov 8  }
  0x23   :  { %24 = dma.hbm_to_vmem [thread:$0]  %s1299_s0, 512, %s19_s8, [#allocation3], %s1084_s1, %s1084_s1, %s1085_s17  }
  0x24   :  { %s1086_s20 = smov [#allocation7]   ;;  %s1030_s24 = scalar_lea.hbm %s1301_s2, 3072 }
  0x25   :  { %s42_s21 = sshll.u32 %s1086_s20, 4  ;;  %p1031_p2 = scmp.ne.s32.totalorder %s1301_s2, %s1030_s24  ;;  %s43_s21 = int_to_ptr.vmem [resolvable:$true] %s42_s21 }
  0x26   :  { %p1034_p3 = scmp.lt.u32.totalorder %s1030_s24, %s1301_s2 }
  0x28   :  { %p1036_p4 = pnand %p1034_p3, %p1031_p2 }
  0x2a   :  { %1039 = shalt.err (!%p1036_p4)
}
  0x2b   :  { %s1040_s30 = scalar_lea.vmem %s43_s21, 3072  ;;  %p1045_p6 = scmp.lt.s32.totalorder %s43_s21, %s43_s21 }
  0x2c   :  { %p1041_p5 = scmp.ne.s32.totalorder %s43_s21, %s1040_s30  ;;  %p1046_p7 = scmp.lt.s32.totalorder %s1040_s30, %s1040_s30 }
  0x2e   :  { %p1047_p8 = por %p1046_p7, %p1045_p6 }
  0x30   :  { %p1048_p9 = pnand %p1047_p8, %p1041_p5 }
  0x32   :  { %1051 = shalt.err (!%p1048_p9)
}
  0x33   :  { %s1087_s0 = smov 192   ;;  %s1088_s6 = smov 12  }
  0x34   :  { %48 = dma.hbm_to_vmem [thread:$0]  %s1301_s2, 3072, %s43_s21, [#allocation6], %s1087_s0, %s1087_s0, %s1088_s6  }
  0x35   :  { %1074 = dma.done.wait [#allocation3], 512  }
  0x36   :  { %1075 = vsyncadd [#allocation3], 4294966784 }
  0x37   :  { %1076 = dma.done.wait [#allocation6], 4608  }
  0x38   :  { %1077 = vsyncadd [#allocation6], 4294962688  ;;  %v1089_v0 = vmov 0   ;;  %v928_v1 = vld [vmem:[#allocation5] sm:$0xff]   ;;  %v929_v2 = vld [vmem:[#allocation5 + $0x8] sm:$0xff]   ;;  %vm188_vm0 = vcmask 523264  }
  0x39   :  { %195 = vmatprep.subr.bf16.mxu0 %v1089_v0  ;;  %541 = vmatprep.mubr.bf16.mxu1 %v1089_v0  ;;  %v930_v3 = vld [vmem:[#allocation5 + $0x10] sm:$0xff]   ;;  %v931_v4 = vld [vmem:[#allocation5 + $0x18] sm:$0xff]   ;;  %v942_v5 = vld [vmem:[#allocation2 + $0x4] ss:$8 sps:$4 sm:$0xff]   ;;  %vm260_vm1 = vcmask 1040384   ;;  %s1091_s10 = smov 32  }
  0x3a   :  { %196 = vmatpush1.bf16.msra.mxu0 %v928_v1  ;;  %v932_v6 = vld [vmem:[#allocation5 + $0x20] sm:$0xff]   ;;  %858 = vmatprep.mubr.msk.bf16.mxu0 %vm188_vm0, %v942_v5  ;;  %v933_v7 = vld [vmem:[#allocation5 + $0x28] sm:$0xff]   ;;  %v934_v8 = vld [vmem:[#allocation5 + $0x30] sm:$0xff]  }
  0x3b   :  { %197 = vmatprep.subr.bf16.mxu0 %v1089_v0  ;;  %v935_v9 = vld [vmem:[#allocation5 + $0x38] sm:$0xff]   ;;  %v936_v10 = vld [vmem:[#allocation5 + $0x40] sm:$0xff]   ;;  %v937_v11 = vld [vmem:[#allocation5 + $0x48] sm:$0xff]  }
  0x3c   :  { %v938_v12 = vld [vmem:[#allocation5 + $0x50] sm:$0xff]   ;;  %v939_v13 = vld [vmem:[#allocation5 + $0x58] sm:$0xff]   ;;  %v940_v14 = vld [vmem:[#allocation2] ss:$8 sps:$4 sm:$0xff]  }
  0x3d   :  { %v943_v15 = vld [vmem:[#allocation2 + $0x14] ss:$8 sps:$4 sm:$0xff]   ;;  %v945_v16 = vld [vmem:[#allocation2 + $0x10] ss:$8 sps:$4 sm:$0xff]   ;;  %v841_v17 = vld [vmem:[%s1302_s3] ss:$0 sm:$0xff] }
  0x3e   :  { %198 = vmatpush1.bf16.msra.mxu0 %v929_v2  ;;  %s1090_s3 = smov 16  }
  0x3f   :  { %199 = vmatprep.subr.bf16.mxu0 %v1089_v0 }
  0x42   :  { %200 = vmatpush1.bf16.msra.mxu0 %v930_v3 }
  0x43   :  { %201 = vmatprep.subr.bf16.mxu0 %v1089_v0 }
  0x46   :  { %202 = vmatpush1.bf16.msra.mxu0 %v931_v4 }
  0x47   :  { %203 = vmatprep.subr.bf16.mxu0 %v1089_v0 }
  0x4a   :  { %204 = vmatpush1.bf16.msra.mxu0 %v932_v6  ;;  %v946_v6 = vld [vmem:[#allocation7 + $0x4] ss:$12 sps:$4 sm:$0xff]  }
  0x4b   :  { %205 = vmatprep.subr.bf16.mxu0 %v1089_v0  ;;  %509 = vmatprep.subr.bf16.mxu1 %v946_v6 }
  0x4e   :  { %206 = vmatpush1.bf16.msra.mxu0 %v933_v7  ;;  %v948_v7 = vld [vmem:[#allocation7] ss:$12 sps:$4 sm:$0xff]  }
  0x4f   :  { %207 = vmatprep.subr.bf16.mxu0 %v1089_v0  ;;  %510 = vmatpush1.bf16.msra.mxu1 %v948_v7 }
  0x52   :  { %208 = vmatpush1.bf16.msra.mxu0 %v934_v8 }
  0x53   :  { %209 = vmatprep.subr.bf16.mxu0 %v1089_v0 }
  0x56   :  { %210 = vmatpush1.bf16.msra.mxu0 %v935_v9 }
  0x57   :  { %211 = vmatprep.subr.bf16.mxu0 %v1089_v0 }
  0x5a   :  { %212 = vmatpush1.bf16.msra.mxu0 %v936_v10 }
  0x5b   :  { %213 = vmatprep.subr.bf16.mxu0 %v1089_v0 }
  0x5e   :  { %214 = vmatpush1.bf16.msra.mxu0 %v937_v11  ;;  %v949_v11 = vld [vmem:[#allocation7 + $0x1c] ss:$12 sps:$4 sm:$0xff]  }
  0x5f   :  { %215 = vmatprep.subr.bf16.mxu0 %v1089_v0  ;;  %511 = vmatprep.subr.bf16.mxu1 %v949_v11 }
  0x62   :  { %216 = vmatpush1.bf16.msra.mxu0 %v938_v12  ;;  %v951_v12 = vld [vmem:[#allocation7 + $0x18] ss:$12 sps:$4 sm:$0xff]  }
  0x63   :  { %217 = vmatprep.subr.bf16.mxu0 %v1089_v0  ;;  %512 = vmatpush1.bf16.msra.mxu1 %v951_v12 }
  0x66   :  { %218 = vmatpush1.bf16.msra.mxu0 %v939_v13  ;;  %v952_v13 = vld [vmem:[#allocation7 + $0x34] ss:$12 sps:$4 sm:$0xff]  }
  0x67   :  { %513 = vmatprep.subr.bf16.mxu1 %v952_v13 }
  0x69   :  { %228 = vmatmul.mubr.bf16.vlgmr.msra.gmra.mrb[0].mxu0 %v940_v14  ;;  %v954_v14 = vld [vmem:[#allocation7 + $0x30] ss:$12 sps:$4 sm:$0xff]  }
  0x6a   :  { %859 = vmatprep.mubr.msk.bf16.mxu0 %vm188_vm0, %v943_v15  ;;  %514 = vmatpush1.bf16.msra.mxu1 %v954_v14  ;;  %v955_v15 = vld [vmem:[#allocation7 + $0x4c] ss:$12 sps:$4 sm:$0xff]  }
  0x6b   :  { %515 = vmatprep.subr.bf16.mxu1 %v955_v15 }
  0x71   :  { %236 = vmatmul.mubr.bf16.gmra.mrb[4].mxu0 %v945_v16  ;;  %v957_v16 = vld [vmem:[#allocation7 + $0x48] ss:$12 sps:$4 sm:$0xff]  }
  0x72   :  { %516 = vmatpush1.bf16.msra.mxu1 %v957_v16 }
 0x13c   :  { %v229_v18 = vpop.f32.mrb[0].mxu0 }
 0x13d   :  { %v1182_v19 = vadd.f32 %v841_v17, %v229_v18  ;;  %v231_v20 = vpop.f32.mrb[1].mxu0 }
 0x13e   :  { %v232_v21 = vpop.f32.mrb[2].mxu0  ;;  %v958_v20 = vld [vmem:[#allocation7 + $0x64] ss:$12 sps:$4 sm:$0xff]  }
 0x13f   :  { %v1184_v22 = vadd.f32 %v841_v17, %v232_v21  ;;  %v234_v23 = vpop.f32.mrb[3].mxu0  ;;  %v251_v24 = vmul.f32 %v1182_v19, %v1182_v19  ;;  %v960_v21 = vld [vmem:[#allocation7 + $0x60] ss:$12 sps:$4 sm:$0xff]   ;;  %517 = vmatprep.subr.bf16.mxu1 %v958_v20 }
 0x140   :  { %518 = vmatpush1.bf16.msra.mxu1 %v960_v21  ;;  %v961_v23 = vld [vmem:[#allocation7 + $0x7c] ss:$12 sps:$4 sm:$0xff]  }
 0x141   :  { %v244_v25 = vadd.f32 %v1184_v22, %v1182_v19  ;;  %v252_v26 = vmul.f32 %v1184_v22, %v1184_v22  ;;  %519 = vmatprep.subr.bf16.mxu1 %v961_v23 }
 0x143   :  { %v245_v27 = vrot.slane %v244_v25, 4  ;;  %v253_v28 = vadd.f32 %v252_v26, %v251_v24  ;;  %v963_v24 = vld [vmem:[#allocation7 + $0x78] ss:$12 sps:$4 sm:$0xff]  }
 0x144   :  { %v237_v29 = vpop.f32.mrb[4].mxu0  ;;  %520 = vmatpush1.bf16.msra.mxu1 %v963_v24 }
 0x145   :  { %v246_v30 = vadd.f32 %v245_v27, %v244_v25  ;;  %v254_v31 = vrot.slane %v253_v28, 4  ;;  %v1192_v32 = vadd.f32 %v841_v17, %v237_v29  ;;  %v239_v33 = vpop.f32.mrb[5].mxu0  ;;  %v964_v27 = vld [vmem:[#allocation7 + $0x94] ss:$12 sps:$4 sm:$0xff]   ;;  %v967_v29 = vld [vmem:[#allocation7 + $0xac] ss:$12 sps:$4 sm:$0xff]  }
 0x146   :  { %v240_v34 = vpop.f32.mrb[6].mxu0  ;;  %521 = vmatprep.subr.bf16.mxu1 %v964_v27 }
 0x147   :  { %v303_v35 = vmul.f32 %v1192_v32, %v1192_v32  ;;  %v1196_v36 = vadd.f32 %v841_v17, %v240_v34  ;;  %v247_v37 = vrot.slane %v246_v30, 2  ;;  %v255_v38 = vadd.f32 %v254_v31, %v253_v28  ;;  %v242_v39 = vpop.f32.mrb[7].mxu0  ;;  %v966_v28 = vld [vmem:[#allocation7 + $0x90] ss:$12 sps:$4 sm:$0xff]   ;;  %v970_v31 = vld [vmem:[#allocation7 + $0x8] ss:$12 sps:$4 sm:$0xff]  }
 0x148   :  { %522 = vmatpush1.bf16.msra.mxu1 %v966_v28  ;;  %v280_v39 = vlaneseq }
 0x149   :  { %v296_v40 = vadd.f32 %v1196_v36, %v1192_v32  ;;  %v304_v41 = vmul.f32 %v1196_v36, %v1196_v36  ;;  %v248_v42 = vadd.f32 %v247_v37, %v246_v30  ;;  %v256_v43 = vrot.slane %v255_v38, 2  ;;  %v969_v30 = vld [vmem:[#allocation7 + $0xa8] ss:$12 sps:$4 sm:$0xff]   ;;  %523 = vmatprep.subr.bf16.mxu1 %v967_v29 }
 0x14b   :  { %v297_v44 = vrot.slane %v296_v40, 4  ;;  %v305_v45 = vadd.f32 %v304_v41, %v303_v35  ;;  %v249_v46 = vrot.slane %v248_v42, 1  ;;  %v257_v47 = vadd.f32 %v256_v43, %v255_v38 }
 0x14c   :  { %524 = vmatpush1.bf16.msra.mxu1 %v969_v30 }
 0x14d   :  { %v298_v48 = vadd.f32 %v297_v44, %v296_v40  ;;  %v306_v49 = vrot.slane %v305_v45, 4  ;;  %v258_v50 = vrot.slane %v257_v47, 1  ;;  %v250_v51 = vadd.f32 %v249_v46, %v248_v42  ;;  %895 = vmatprep.subr.bf16.mxu1 %v970_v31 }
 0x14f   :  { %v259_v52 = vadd.f32 %v258_v50, %v257_v47  ;;  %v299_v53 = vrot.slane %v298_v48, 2  ;;  %v307_v54 = vadd.f32 %v306_v49, %v305_v45  ;;  %v1212_v45 = vshrl.u32 %v280_v39, 7 }
 0x151   :  { %v261_v55 = vsel %vm260_vm1, %v250_v51, %v259_v52  ;;  %v300_v56 = vadd.f32 %v299_v53, %v298_v48  ;;  %v308_v57 = vrot.slane %v307_v54, 2  ;;  %v1215_v48 = vsub.s32 0, %v1212_v45 }
 0x152   :  { %262 = vrot.lane.b32.xlu0 %v261_v55, %s1085_s17  ;;  %v1219_v52 = vsub.s32 1, %v1212_v45  ;;  %v614_v13 = vadd.s32 16, %v1212_v45  ;;  %vm672_vm2 = vcmp.lt.s32.totalorder %v1212_v45, 1  ;;  %v620_v23 = vand.u32 15, %v1212_v45 }
 0x153   :  { %v301_v58 = vrot.slane %v300_v56, 1  ;;  %v309_v59 = vadd.f32 %v308_v57, %v307_v54  ;;  %vm689_vm5 = vcmp.lt.s32.totalorder %v1212_v45, 7 }
 0x154   :  { %v634_v20 = vand.u32 15, %v614_v13  ;;  %vm664_vm4 = vcmp.ge.s32.totalorder %v620_v23, 1 }
 0x155   :  { %v302_v60 = vadd.f32 %v301_v58, %v300_v56  ;;  %v310_v61 = vrot.slane %v309_v59, 1 }
 0x156   :  { %vm666_vm3 = vcmp.ge.s32.totalorder %v634_v20, 1 }
 0x157   :  { %v311_v62 = vadd.f32 %v310_v61, %v309_v59 }
 0x159   :  { %v312_v63 = vsel %vm260_vm1, %v302_v60, %v311_v62 }
 0x15a   :  { %313 = vrot.lane.b32.xlu0 %v312_v63, %s1085_s17 }
 0x1c4   :  { %v263_v1 = vpop.permute.xlu0 %262 }
 0x1c5   :  { %v264_v2 = vadd.f32 %v263_v1, %v261_v55 }
 0x1c7   :  { %265 = vrot.lane.b32.xlu1 %v264_v2, %s1090_s3 }
 0x1cc   :  { %v314_v3 = vpop.permute.xlu0 %313 }
 0x1cd   :  { %v315_v4 = vadd.f32 %v314_v3, %v312_v63  ;;  %v971_v63 = vld [vmem:[#allocation7 + $0x20] ss:$12 sps:$4 sm:$0xff]  }
 0x1cf   :  { %316 = vrot.lane.b32.xlu1 %v315_v4, %s1090_s3 }
 0x239   :  { %v266_v5 = vpop.permute.xlu1 %265 }
 0x23a   :  { %v267_v8 = vadd.f32 %v266_v5, %v264_v2 }
 0x23c   :  { %268 = vrot.lane.b32.xlu0 %v267_v8, %s1091_s10 }
 0x241   :  { %v317_v9 = vpop.permute.xlu1 %316 }
 0x242   :  { %v318_v10 = vadd.f32 %v317_v9, %v315_v4  ;;  %v973_v9 = vld [vmem:[#allocation7 + $0x50] ss:$12 sps:$4 sm:$0xff]  }
 0x244   :  { %319 = vrot.lane.b32.xlu1 %v318_v10, %s1091_s10 }
 0x2ae   :  { %v269_v17 = vpop.permute.xlu0 %268 }
 0x2af   :  { %v270_v18 = vadd.f32 %v269_v17, %v267_v8 }
 0x2b1   :  { %271 = vrot.lane.b32.xlu0 %v270_v18, %s1081_s28 }
 0x2b6   :  { %v320_v25 = vpop.permute.xlu1 %319 }
 0x2b7   :  { %v321_v26 = vadd.f32 %v320_v25, %v318_v10  ;;  %v977_v10 = vld [vmem:[#allocation7 + $0xb0] ss:$12 sps:$4 sm:$0xff]  }
 0x2b9   :  { %322 = vrot.lane.b32.xlu1 %v321_v26, %s1081_s28 }
 0x323   :  { %v272_v33 = vpop.permute.xlu0 %271 }
 0x324   :  { %v273_v34 = vadd.f32 %v272_v33, %v270_v18 }
 0x326   :  { %v274_v35 = vmul.f32 0.00390625, %v273_v34 }
 0x328   :  { %v275_v37 = vmul.f32 %v274_v35, %v274_v35  ;;  %v283_v51 = vrot.slane %v274_v35, %v1215_v48 }
 0x32a   :  { %v277_v38 = vrot.slane %v275_v37, 7  ;;  %v284_v54 = vsub.f32 %v1182_v19, %v283_v51  ;;  %v285_v55 = vsub.f32 %v1184_v22, %v283_v51  ;;  %v972_v22 = vld [vmem:[#allocation7 + $0x38] ss:$12 sps:$4 sm:$0xff]  }
 0x32b   :  { %v323_v40 = vpop.permute.xlu1 %322 }
 0x32c   :  { %v279_v41 = vsub.f32 %v274_v35, %v277_v38  ;;  %v324_v42 = vadd.f32 %v323_v40, %v321_v26  ;;  %v615_v40 = vadd.s32 24, %v1212_v45 }
 0x32e   :  { %v286_v43 = vadd.f32 1e-05, %v279_v41  ;;  %v325_v44 = vmul.f32 0.00390625, %v324_v42  ;;  %v613_v41 = vadd.s32 8, %v1212_v45  ;;  %v641_v42 = vand.u32 15, %v615_v40 }
 0x330   :  { %978 = vrsqrt.f32 %v286_v43  ;;  %v326_v46 = vmul.f32 %v325_v44, %v325_v44  ;;  %v334_v59 = vrot.slane %v325_v44, %v1215_v48  ;;  %vm684_vm6 = vcmp.le.s32.totalorder %v641_v42, 14 }
 0x332   :  { %v328_v47 = vrot.slane %v326_v46, 7  ;;  %v335_v2 = vsub.f32 %v1192_v32, %v334_v59  ;;  %v336_v3 = vsub.f32 %v1196_v36, %v334_v59  ;;  %v974_v32 = vld [vmem:[#allocation7 + $0x68] ss:$12 sps:$4 sm:$0xff]   ;;  %v975_v36 = vld [vmem:[#allocation7 + $0x80] ss:$12 sps:$4 sm:$0xff]  }
 0x334   :  { %v330_v49 = vsub.f32 %v325_v44, %v328_v47  ;;  %v627_v44 = vand.u32 15, %v613_v41 }
 0x336   :  { %v337_v50 = vadd.f32 1e-05, %v330_v49  ;;  %vm682_vm7 = vcmp.le.s32.totalorder %v627_v44, 14 }
 0x338   :  { %980 = vrsqrt.f32 %v337_v50 }
 0x33a   :  { %v979_v53 = vpop.eup %978 }
 0x33b   :  { %v291_v56 = vrot.slane %v979_v53, %v1219_v52 }
 0x33d   :  { %v292_v57 = vmul.f32 %v291_v56, %v284_v54  ;;  %v293_v58 = vmul.f32 %v291_v56, %v285_v55 }
 0x33f   :  { %v294_v60 = vmax.f32 %v292_v57, 0.0  ;;  %v295_v61 = vmax.f32 %v293_v58, 0.0  ;;  %v884_v57 = vld [vmem:[%s1303_s4] ss:$0 sm:$0xff]  ;;  %s1092_s4 = smov [#allocation8]  }
 0x341   :  { %v347_v62 = vpack.c.bf16 %v295_v61, %v294_v60 }
 0x342   :  { %v981_v1 = vpop.eup %980 }
 0x343   :  { %542 = vmatmul.mubr.bf16.vlgmr.msra.gmra.mrb[0].mxu1 %v347_v62  ;;  %v342_v19 = vrot.slane %v981_v1, %v1219_v52 }
 0x344   :  { %896 = vmatpush3.bf16.msra.mxu1 %v970_v31  ;;  %551 = vmatprep.mubr.bf16.mxu1 %v1089_v0  ;;  %v976_v0 = vld [vmem:[#allocation7 + $0x98] ss:$12 sps:$4 sm:$0xff]  }
 0x345   :  { %897 = vmatprep.subr.bf16.mxu1 %v971_v63  ;;  %v343_v4 = vmul.f32 %v342_v19, %v335_v2  ;;  %v344_v5 = vmul.f32 %v342_v19, %v336_v3 }
 0x347   :  { %v345_v6 = vmax.f32 %v343_v4, 0.0  ;;  %v346_v7 = vmax.f32 %v344_v5, 0.0 }
 0x348   :  { %898 = vmatpush3.bf16.msra.mxu1 %v971_v63 }
 0x349   :  { %899 = vmatprep.subr.bf16.mxu1 %v972_v22  ;;  %v348_v8 = vpack.c.bf16 %v346_v7, %v345_v6 }
 0x34b   :  { %552 = vmatmul.mubr.bf16.gmra.mrb[4].mxu1 %v348_v8 }
 0x34c   :  { %900 = vmatpush3.bf16.msra.mxu1 %v972_v22  ;;  %911 = vmatprep.mubr.bf16.mxu1 %v347_v62 }
 0x34d   :  { %901 = vmatprep.subr.bf16.mxu1 %v973_v9 }
 0x350   :  { %902 = vmatpush3.bf16.msra.mxu1 %v973_v9 }
 0x351   :  { %903 = vmatprep.subr.bf16.mxu1 %v974_v32 }
 0x354   :  { %904 = vmatpush3.bf16.msra.mxu1 %v974_v32 }
 0x355   :  { %905 = vmatprep.subr.bf16.mxu1 %v975_v36 }
 0x358   :  { %906 = vmatpush3.bf16.msra.mxu1 %v975_v36 }
 0x359   :  { %907 = vmatprep.subr.bf16.mxu1 %v976_v0 }
 0x35c   :  { %908 = vmatpush3.bf16.msra.mxu1 %v976_v0 }
 0x35d   :  { %909 = vmatprep.subr.bf16.mxu1 %v977_v10 }
 0x360   :  { %910 = vmatpush3.bf16.msra.mxu1 %v977_v10 }
 0x363   :  { %912 = vmatmul.mubr.bf16.vlgmr.msra.gmra.mrb[8].mxu1 %v348_v8 }
 0x416   :  { %v543_v11 = vpop.f32.mrb[0].mxu1 }
 0x417   :  { %v545_v12 = vpop.f32.mrb[1].mxu1  ;;  %v668_v15 = vrot.slane %v543_v11, 7 }
 0x418   :  { %v547_v14 = vpop.f32.mrb[2].mxu1 }
 0x419   :  { %v669_v16 = vrot.slane %v547_v14, 7  ;;  %v549_v17 = vpop.f32.mrb[3].mxu1 }
 0x41b   :  { %v675_v18 = vsel %vm672_vm2, %v668_v15, %v669_v16 }
 0x41c   :  { %v699_v21 = vadd.f32 %v675_v18, %v549_v17 }
 0x41e   :  { %v553_v24 = vpop.f32.mrb[4].mxu1 }
 0x41f   :  { %v670_v25 = vrot.slane %v553_v24, 7  ;;  %v555_v26 = vpop.f32.mrb[5].mxu1 }
 0x420   :  { %v557_v27 = vpop.f32.mrb[6].mxu1 }
 0x421   :  { %v674_v28 = vsel %vm672_vm2, %v669_v16, %v670_v25  ;;  %v671_v29 = vrot.slane %v557_v27, 7  ;;  %v559_v30 = vpop.f32.mrb[7].mxu1 }
 0x422   :  { %v679_v31 = vsel %vm666_vm3, %v674_v28, 0.0 }
 0x423   :  { %v700_v33 = vadd.f32 %v679_v31, %v555_v26  ;;  %v676_v34 = vsel %vm672_vm2, %v671_v29, %v668_v15  ;;  %v673_v35 = vsel %vm672_vm2, %v670_v25, %v671_v29 }
 0x424   :  { %v677_v37 = vsel %vm664_vm4, %v676_v34, 0.0  ;;  %v701_v38 = vadd.f32 %v673_v35, %v559_v30 }
 0x425   :  { %v698_v39 = vadd.f32 %v677_v37, %v545_v12 }
 0x436   :  { %v913_v43 = vpop.f32.mrb[8].mxu1 }
 0x437   :  { %v596_v46 = vpop.f32.mrb[9].mxu1  ;;  %v687_v50 = vrot.slane %v913_v43, 1 }
 0x438   :  { %v685_v47 = vrot.slane %v596_v46, 1  ;;  %v914_v49 = vpop.f32.mrb[10].mxu1 }
 0x439   :  { %v688_v51 = vrot.slane %v914_v49, 1  ;;  %v599_v53 = vpop.f32.mrb[11].mxu1 }
 0x43a   :  { %v686_v54 = vrot.slane %v599_v53, 1 }
 0x43b   :  { %v690_v55 = vsel %vm689_vm5, %v687_v50, %v688_v51  ;;  %v693_v56 = vsel %vm689_vm5, %v688_v51, %v685_v47 }
 0x43c   :  { %v697_v58 = vsel %vm684_vm6, %v693_v56, 0.0  ;;  %v704_v59 = vadd.f32 %v700_v33, %v690_v55  ;;  %v691_v60 = vsel %vm689_vm5, %v686_v54, %v687_v50  ;;  %v692_v61 = vsel %vm689_vm5, %v685_v47, %v686_v54 }
 0x43d   :  { %v705_v62 = vadd.f32 %v701_v38, %v697_v58  ;;  %v695_v63 = vsel %vm682_vm7, %v691_v60, 0.0  ;;  %v702_v1 = vadd.f32 %v698_v39, %v692_v61 }
 0x43e   :  { %v1246_v45 = vadd.f32 %v884_v57, %v704_v59  ;;  %v703_v2 = vadd.f32 %v699_v21, %v695_v63 }
 0x43f   :  { %v1248_v3 = vadd.f32 %v884_v57, %v705_v62  ;;  %v1250_v19 = vadd.f32 %v884_v57, %v702_v1 }
 0x440   :  { %v775_v22 = vmul.f32 %v1246_v45, %v1246_v45  ;;  %v1254_v4 = vadd.f32 %v884_v57, %v703_v2 }
 0x441   :  { %v724_v5 = vmul.f32 %v1250_v19, %v1250_v19  ;;  %v768_v6 = vadd.f32 %v1248_v3, %v1246_v45  ;;  %v776_v7 = vmul.f32 %v1248_v3, %v1248_v3 }
 0x442   :  { %v725_v8 = vmul.f32 %v1254_v4, %v1254_v4  ;;  %v717_v9 = vadd.f32 %v1254_v4, %v1250_v19 }
 0x443   :  { %v769_v32 = vrot.slane %v768_v6, 4  ;;  %v777_v36 = vadd.f32 %v776_v7, %v775_v22 }
 0x444   :  { %v718_v0 = vrot.slane %v717_v9, 4  ;;  %v726_v10 = vadd.f32 %v725_v8, %v724_v5 }
 0x445   :  { %v770_v11 = vadd.f32 %v769_v32, %v768_v6  ;;  %v778_v12 = vrot.slane %v777_v36, 4 }
 0x446   :  { %v719_v13 = vadd.f32 %v718_v0, %v717_v9  ;;  %v727_v14 = vrot.slane %v726_v10, 4 }
 0x447   :  { %v771_v15 = vrot.slane %v770_v11, 2  ;;  %v779_v16 = vadd.f32 %v778_v12, %v777_v36 }
 0x448   :  { %v720_v17 = vrot.slane %v719_v13, 2  ;;  %v728_v18 = vadd.f32 %v727_v14, %v726_v10 }
 0x449   :  { %v772_v20 = vadd.f32 %v771_v15, %v770_v11  ;;  %v780_v21 = vrot.slane %v779_v16, 2 }
 0x44a   :  { %v721_v23 = vadd.f32 %v720_v17, %v719_v13  ;;  %v729_v24 = vrot.slane %v728_v18, 2 }
 0x44b   :  { %v773_v25 = vrot.slane %v772_v20, 1  ;;  %v781_v26 = vadd.f32 %v780_v21, %v779_v16 }
 0x44c   :  { %v722_v27 = vrot.slane %v721_v23, 1  ;;  %v730_v28 = vadd.f32 %v729_v24, %v728_v18 }
 0x44d   :  { %v782_v29 = vrot.slane %v781_v26, 1  ;;  %v774_v31 = vadd.f32 %v773_v25, %v772_v20 }
 0x44e   :  { %v731_v30 = vrot.slane %v730_v28, 1  ;;  %v723_v34 = vadd.f32 %v722_v27, %v721_v23 }
 0x44f   :  { %v783_v33 = vadd.f32 %v782_v29, %v781_v26 }
 0x450   :  { %v732_v35 = vadd.f32 %v731_v30, %v730_v28 }
 0x451   :  { %v784_v37 = vsel %vm260_vm1, %v774_v31, %v783_v33 }
 0x452   :  { %785 = vrot.lane.b32.xlu1 %v784_v37, %s1085_s17  ;;  %v733_v38 = vsel %vm260_vm1, %v723_v34, %v732_v35 }
 0x453   :  { %734 = vrot.lane.b32.xlu0 %v733_v38, %s1085_s17 }
 0x4c4   :  { %v786_v39 = vpop.permute.xlu1 %785 }
 0x4c5   :  { %v787_v40 = vadd.f32 %v786_v39, %v784_v37  ;;  %v735_v41 = vpop.permute.xlu0 %734 }
 0x4c6   :  { %v736_v42 = vadd.f32 %v735_v41, %v733_v38 }
 0x4c7   :  { %788 = vrot.lane.b32.xlu1 %v787_v40, %s1090_s3 }
 0x4c8   :  { %737 = vrot.lane.b32.xlu0 %v736_v42, %s1090_s3 }
 0x539   :  { %v789_v43 = vpop.permute.xlu1 %788 }
 0x53a   :  { %v790_v44 = vadd.f32 %v789_v43, %v787_v40  ;;  %v738_v46 = vpop.permute.xlu0 %737 }
 0x53b   :  { %v739_v47 = vadd.f32 %v738_v46, %v736_v42 }
 0x53c   :  { %791 = vrot.lane.b32.xlu1 %v790_v44, %s1091_s10 }
 0x53d   :  { %740 = vrot.lane.b32.xlu0 %v739_v47, %s1091_s10 }
 0x5ae   :  { %v792_v49 = vpop.permute.xlu1 %791 }
 0x5af   :  { %v793_v50 = vadd.f32 %v792_v49, %v790_v44  ;;  %v741_v51 = vpop.permute.xlu0 %740 }
 0x5b0   :  { %v742_v53 = vadd.f32 %v741_v51, %v739_v47 }
 0x5b1   :  { %794 = vrot.lane.b32.xlu1 %v793_v50, %s1081_s28 }
 0x5b2   :  { %743 = vrot.lane.b32.xlu0 %v742_v53, %s1081_s28  ;;  %s828_s28 = sshll.u32 %s1092_s4, 4  ;;  %s829_s28 = int_to_ptr.vmem [resolvable:$true] %s828_s28 }
 0x5b3   :  { %s1052_s13 = scalar_lea.vmem %s829_s28, 512  ;;  %p1057_p11 = scmp.lt.s32.totalorder %s829_s28, %s829_s28 }
 0x5b4   :  { %p1053_p10 = scmp.ne.s32.totalorder %s829_s28, %s1052_s13  ;;  %p1058_p12 = scmp.lt.s32.totalorder %s1052_s13, %s1052_s13 }
 0x5b6   :  { %p1059_p13 = por %p1058_p12, %p1057_p11 }
 0x5b8   :  { %p1060_p0 = pnand %p1059_p13, %p1053_p10 }
 0x623   :  { %v795_v54 = vpop.permute.xlu1 %794 }
 0x624   :  { %v796_v55 = vadd.f32 %v795_v54, %v793_v50  ;;  %v744_v56 = vpop.permute.xlu0 %743 }
 0x625   :  { %v745_v57 = vadd.f32 %v744_v56, %v742_v53 }
 0x626   :  { %v797_v58 = vmul.f32 0.00390625, %v796_v55 }
 0x627   :  { %v746_v59 = vmul.f32 0.00390625, %v745_v57 }
 0x628   :  { %v798_v60 = vmul.f32 %v797_v58, %v797_v58  ;;  %v806_v6 = vrot.slane %v797_v58, %v1215_v48 }
 0x629   :  { %v747_v61 = vmul.f32 %v746_v59, %v746_v59  ;;  %v755_v7 = vrot.slane %v746_v59, %v1215_v48 }
 0x62a   :  { %v800_v62 = vrot.slane %v798_v60, 7  ;;  %v807_v32 = vsub.f32 %v1246_v45, %v806_v6  ;;  %v808_v36 = vsub.f32 %v1248_v3, %v806_v6 }
 0x62b   :  { %v749_v63 = vrot.slane %v747_v61, 7  ;;  %v756_v10 = vsub.f32 %v1250_v19, %v755_v7  ;;  %v757_v11 = vsub.f32 %v1254_v4, %v755_v7 }
 0x62c   :  { %v802_v1 = vsub.f32 %v797_v58, %v800_v62 }
 0x62d   :  { %v751_v2 = vsub.f32 %v746_v59, %v749_v63 }
 0x62e   :  { %v809_v22 = vadd.f32 1e-05, %v802_v1 }
 0x62f   :  { %v758_v5 = vadd.f32 1e-05, %v751_v2 }
 0x630   :  { %982 = vrsqrt.f32 %v809_v22 }
 0x631   :  { %984 = vrsqrt.f32 %v758_v5 }
 0x63a   :  { %v983_v8 = vpop.eup %982 }
 0x63b   :  { %v985_v9 = vpop.eup %984  ;;  %v814_v0 = vrot.slane %v983_v8, %v1219_v52 }
 0x63c   :  { %v763_v12 = vrot.slane %v985_v9, %v1219_v52 }
 0x63d   :  { %v815_v13 = vmul.f32 %v814_v0, %v807_v32  ;;  %v816_v14 = vmul.f32 %v814_v0, %v808_v36 }
 0x63e   :  { %v764_v15 = vmul.f32 %v763_v12, %v756_v10  ;;  %v765_v48 = vmul.f32 %v763_v12, %v757_v11 }
 0x63f   :  { %v817_v16 = vmax.f32 %v815_v13, 0.0  ;;  %v818_v17 = vmax.f32 %v816_v14, 0.0 }
 0x640   :  { %v766_v18 = vmax.f32 %v764_v15, 0.0  ;;  %v767_v45 = vmax.f32 %v765_v48, 0.0 }
 0x641   :  { %821 = vst [vmem:[#allocation8 + $0x10] sm:$0xff] %v817_v16  ;;  %822 = vst [vmem:[#allocation8 + $0x18] sm:$0xff] %v818_v17 }
 0x642   :  { %819 = vst [vmem:[#allocation8] sm:$0xff] %v766_v18  ;;  %820 = vst [vmem:[#allocation8 + $0x8] sm:$0xff] %v767_v45 }
 0x643   :  { %1063 = shalt.err (!%p1060_p0)
}
 0x644   :  { %s1064_s16 = scalar_lea.hbm %s1304_s5, 512 }
 0x645   :  { %p1065_p1 = scmp.ne.s32.totalorder %s1304_s5, %s1064_s16  ;;  %p1068_p2 = scmp.lt.u32.totalorder %s1064_s16, %s1304_s5 }
 0x647   :  { %p1070_p3 = pnand %p1068_p2, %p1065_p1 }
 0x649   :  { %1073 = shalt.err (!%p1070_p3)
}
 0x64a   :  { %834 = dma.vmem_to_hbm [thread:$0]  %s829_s28, 512, %s1304_s5, [#allocation4], %s1084_s1, %s1084_s1, %s1085_s17  }
 0x64b   :  { %1078 = dma.done.wait [#allocation4], 512  }
 0x64c   :  { %1079 = vsyncadd [#allocation4], 4294966784 }
 0x64d   :  { %838 = vsyncpa [#allocation3], 1 }
 0x64e   :  { %839 = vsyncpa [#allocation6], 1 }
 0x64f   :  { %840 = vsyncpa [#allocation4], 1 }

</bundles_post_ra>
